<compile_context>
chip_gen: v7x
topology: tpu7x:2x2x1
jax: 0.10.0
libtpu: 0.0.40
codegen_flags: <defaults>
</compile_context>

<pallas_src>
import jax
import jax.numpy as jnp
from jax.experimental import pallas as pl
from jax.experimental.pallas import tpu as pltpu


def _round_up(x, m):
    return ((x + m - 1) // m) * m


# ---------------------------------------------------------------------------
# Parameter packing: one f32 buffer, TRANSPOSED blocks, 8-row aligned.
# Weights are stored as (fan_out, fan_in), biases as (fan_out, 1) columns,
# all zero-padded to a common lane width.
# ---------------------------------------------------------------------------
def pack_params(params, obs_size, action_size, hidden_size):
    w1, b1, w2, b2, w3e, w3a, b3, w4, b4 = params
    w_max = max(hidden_size, obs_size, action_size, 1)

    blocks, offsets, row = [], {}, 0

    def add(name, a):
        nonlocal row
        a = jnp.pad(a, ((0, (-a.shape[0]) % 8), (0, w_max - a.shape[1])))
        offsets[name] = row
        blocks.append(a)
        row += a.shape[0]

    add("w1", w1.T)     # (H, OBS)
    add("b1", b1.T)     # (H, 1)
    add("w2", w2.T)     # (H, H)
    add("b2", b2.T)     # (H, 1)
    add("w3e", w3e.T)   # (H, H)
    add("w3a", w3a.T)   # (H, ACT)
    add("b3", b3.T)     # (H, 1)
    add("w4", w4.T)     # (OBS, H)
    add("b4", b4.T)     # (OBS, 1)
    return jnp.concatenate(blocks, axis=0), offsets


# ---------------------------------------------------------------------------
# Kernel (transposed layout): activations are (features, batch_tile).
#   h1 = relu(W1^T X + b1); h2 = relu(W2^T h1 + b2)
#   h3 = relu(W3e^T h2 + W3a^T A + b3); out = W4^T h3 + b4
# ---------------------------------------------------------------------------
def make_kernel(obs_size, action_size, hidden_size, offsets):
    OBS, ACT, H = obs_size, action_size, hidden_size
    o = offsets

    def kernel(obs_ref, act_ref, p_ref, out_ref):
        obs_t = obs_ref[...]     # (OBS, Bt)
        act_t = act_ref[...]     # (ACT, Bt)

        # Static, 8-row-aligned views into the single packed parameter buffer.
        w1 = p_ref[o["w1"]:o["w1"] + H, :OBS]
        b1 = p_ref[o["b1"]:o["b1"] + H, :1]
        w2 = p_ref[o["w2"]:o["w2"] + H, :H]
        b2 = p_ref[o["b2"]:o["b2"] + H, :1]
        w3e = p_ref[o["w3e"]:o["w3e"] + H, :H]
        w3a = p_ref[o["w3a"]:o["w3a"] + H, :ACT]
        b3 = p_ref[o["b3"]:o["b3"] + H, :1]
        w4 = p_ref[o["w4"]:o["w4"] + OBS, :H]
        b4 = p_ref[o["b4"]:o["b4"] + OBS, :1]

        # Encoder: Linear -> ReLU -> Linear -> ReLU   (all lane-dense on batch)
        h1 = jnp.maximum(
            jnp.dot(w1, obs_t, preferred_element_type=jnp.float32) + b1, 0.0)
        h2 = jnp.maximum(
            jnp.dot(w2, h1, preferred_element_type=jnp.float32) + b2, 0.0)

        # Decoder L1 on concat([h2, act]) == W3e^T h2 + W3a^T act
        h3 = jnp.maximum(
            jnp.dot(w3e, h2, preferred_element_type=jnp.float32)
            + jnp.dot(w3a, act_t, preferred_element_type=jnp.float32)
            + b3, 0.0)

        # Decoder L2 (no activation)
        out = jnp.dot(w4, h3, preferred_element_type=jnp.float32) + b4
        out_ref[...] = out.astype(out_ref.dtype)

    return kernel


# ---------------------------------------------------------------------------
# Wrapper.
#   small B  -> gridless whole-array VMEM (still transposed layout)
#   large B  -> zero-pad batch to a tile multiple, grid over batch (>=2 steps
#               when possible, "parallel" so v7x splits it over both TCs),
#               packed params resident across the grid.
# ---------------------------------------------------------------------------
def forward_prediction(obs, action, packed, offsets,
                       obs_size, action_size, hidden_size,
                       batch_tile=4096, small_batch_threshold=1024):
    B = obs.shape[0]
    kernel = make_kernel(obs_size, action_size, hidden_size, offsets)

    obs_t = obs.astype(jnp.float32).T        # (OBS, B)
    act_t = action.astype(jnp.float32).T     # (ACT, B)

    if B <= small_batch_threshold:
        vmem = pltpu.MemorySpace.VMEM
        out_t = pl.pallas_call(
            kernel,
            out_shape=jax.ShapeDtypeStruct((obs_size, B), jnp.float32),
            in_specs=[pl.BlockSpec(memory_space=vmem)] * 3,
            out_specs=pl.BlockSpec(memory_space=vmem),
        )(obs_t, act_t, packed)
        return out_t.T

    # --- tiled path ---------------------------------------------------------
    if B >= 2 * batch_tile:
        tile = batch_tile
    else:
        # Aim for (at least) 2 grid steps so both v7x TensorCores get work.
        tile = max(128, _round_up(pl.cdiv(B, 2), 128))
    b_pad = pl.cdiv(B, tile) * tile
    if b_pad != B:
        obs_t = jnp.pad(obs_t, ((0, 0), (0, b_pad - B)))
        act_t = jnp.pad(act_t, ((0, 0), (0, b_pad - B)))

    out_t = pl.pallas_call(
        kernel,
        out_shape=jax.ShapeDtypeStruct((obs_size, b_pad), jnp.float32),
        grid=(b_pad // tile,),
        in_specs=[
            pl.BlockSpec((obs_size, tile), lambda i: (0, i)),
            pl.BlockSpec((action_size, tile), lambda i: (0, i)),
            # Constant index_map: the ~32 KiB packed params stay resident
            # across the whole grid (DMA'd once, not per step).
            pl.BlockSpec(packed.shape, lambda i: (0, 0)),
        ],
        out_specs=pl.BlockSpec((obs_size, tile), lambda i: (0, i)),
        compiler_params=pltpu.CompilerParams(
            dimension_semantics=("parallel",)),
    )(obs_t, act_t, packed)
    return out_t[:, :B].T


# ---------------------------------------------------------------------------
# Init / reference (PyTorch-default-style U(-1/sqrt(fan_in), 1/sqrt(fan_in))).
# Weights kept in "math" orientation (fan_in, fan_out); packing transposes.
# ---------------------------------------------------------------------------
def init_params(key, observation_size, action_size, hidden_size):
    def linear(key, fan_in, fan_out):
        kw, kb = jax.random.split(key)
        bound = 1.0 / jnp.sqrt(jnp.asarray(fan_in, jnp.float32))
        w = jax.random.uniform(kw, (fan_in, fan_out), jnp.float32, -bound, bound)
        b = jax.random.uniform(kb, (1, fan_out), jnp.float32, -bound, bound)
        return w, b

    k1, k2, k3, k4 = jax.random.split(key, 4)
    w1, b1 = linear(k1, observation_size, hidden_size)             # encoder L1
    w2, b2 = linear(k2, hidden_size, hidden_size)                  # encoder L2
    w3, b3 = linear(k3, hidden_size + action_size, hidden_size)    # decoder L1
    w4, b4 = linear(k4, hidden_size, observation_size)             # decoder L2
    w3e = w3[:hidden_size, :]      # acts on encoded obs (cat order: obs first)
    w3a = w3[hidden_size:, :]      # acts on action
    return (w1, b1, w2, b2, w3e, w3a, b3, w4, b4)


def reference_forward(obs, action, params):
    (w1, b1, w2, b2, w3e, w3a, b3, w4, b4) = params
    h1 = jnp.maximum(obs @ w1 + b1, 0.0)
    h2 = jnp.maximum(h1 @ w2 + b2, 0.0)
    combined = jnp.concatenate([h2, action], axis=1)
    w3 = jnp.concatenate([w3e, w3a], axis=0)
    h3 = jnp.maximum(combined @ w3 + b3, 0.0)
    return h3 @ w4 + b4


if __name__ == "__main__":
    OBS, ACT, HID = 16, 4, 32

    key = jax.random.PRNGKey(0)
    k_obs, k_act, k_params = jax.random.split(key, 3)
    params = init_params(k_params, OBS, ACT, HID)
    packed, offsets = pack_params(params, OBS, ACT, HID)

    # --- small-batch path (gridless, whole-array VMEM) -----------------------
    B = 8
    obs = jax.random.normal(k_obs, (B, OBS), jnp.float32)
    action = jax.random.normal(k_act, (B, ACT), jnp.float32)
    out = jax.block_until_ready(
        forward_prediction(obs, action, packed, offsets, OBS, ACT, HID))
    ref = reference_forward(obs, action, params)
    assert out.shape == (B, OBS)
    assert jnp.allclose(out, ref, atol=2e-5, rtol=2e-5)

    # --- large, non-divisible batch (padded, 2-step parallel grid) -----------
    BB = 4000
    obs_b = jax.random.normal(jax.random.PRNGKey(1), (BB, OBS), jnp.float32)
    act_b = jax.random.normal(jax.random.PRNGKey(2), (BB, ACT), jnp.float32)
    out_b = jax.block_until_ready(
        forward_prediction(obs_b, act_b, packed, offsets, OBS, ACT, HID))
    ref_b = reference_forward(obs_b, act_b, params)
    assert out_b.shape == (BB, OBS)
    assert jnp.allclose(out_b, ref_b, atol=2e-5, rtol=2e-5)

    print("KERNEL_OK")
</pallas_src>

<mosaic_0001>
module attributes {stable_mosaic.version = 11 : i64} {
  func.func @kernel(%arg0: memref<16x8xf32, #tpu.memory_space<vmem>>, %arg1: memref<4x8xf32, #tpu.memory_space<vmem>>, %arg2: memref<256x32xf32, #tpu.memory_space<vmem>>, %arg3: memref<16x8xf32, #tpu.memory_space<vmem>>) attributes {dimension_semantics = [], scalar_prefetch = 0 : i64, scratch_operands = 0 : i64, tpu.core_type = #tpu.core_type<tc>} {
    %c0 = arith.constant 0 : index
    %c0_0 = arith.constant 0 : index
    %0 = vector.load %arg0[%c0, %c0_0] : memref<16x8xf32, #tpu.memory_space<vmem>>, vector<16x8xf32>
    %c0_1 = arith.constant 0 : index
    %c0_2 = arith.constant 0 : index
    %1 = vector.load %arg1[%c0_1, %c0_2] : memref<4x8xf32, #tpu.memory_space<vmem>>, vector<4x8xf32>
    %c0_3 = arith.constant 0 : index
    %c0_4 = arith.constant 0 : index
    %2 = vector.load %arg2[%c0_3, %c0_4] : memref<256x32xf32, #tpu.memory_space<vmem>>, vector<32x16xf32>
    %c32 = arith.constant 32 : index
    %c0_5 = arith.constant 0 : index
    %3 = vector.load %arg2[%c32, %c0_5] : memref<256x32xf32, #tpu.memory_space<vmem>>, vector<32x1xf32>
    %c64 = arith.constant 64 : index
    %c0_6 = arith.constant 0 : index
    %4 = vector.load %arg2[%c64, %c0_6] : memref<256x32xf32, #tpu.memory_space<vmem>>, vector<32x32xf32>
    %c96 = arith.constant 96 : index
    %c0_7 = arith.constant 0 : index
    %5 = vector.load %arg2[%c96, %c0_7] : memref<256x32xf32, #tpu.memory_space<vmem>>, vector<32x1xf32>
    %c128 = arith.constant 128 : index
    %c0_8 = arith.constant 0 : index
    %6 = vector.load %arg2[%c128, %c0_8] : memref<256x32xf32, #tpu.memory_space<vmem>>, vector<32x32xf32>
    %c160 = arith.constant 160 : index
    %c0_9 = arith.constant 0 : index
    %7 = vector.load %arg2[%c160, %c0_9] : memref<256x32xf32, #tpu.memory_space<vmem>>, vector<32x4xf32>
    %c192 = arith.constant 192 : index
    %c0_10 = arith.constant 0 : index
    %8 = vector.load %arg2[%c192, %c0_10] : memref<256x32xf32, #tpu.memory_space<vmem>>, vector<32x1xf32>
    %c224 = arith.constant 224 : index
    %c0_11 = arith.constant 0 : index
    %9 = vector.load %arg2[%c224, %c0_11] : memref<256x32xf32, #tpu.memory_space<vmem>>, vector<16x32xf32>
    %c240 = arith.constant 240 : index
    %c0_12 = arith.constant 0 : index
    %10 = vector.load %arg2[%c240, %c0_12] : memref<256x32xf32, #tpu.memory_space<vmem>>, vector<16x1xf32>
    %cst = arith.constant dense<0.000000e+00> : vector<32x8xf32>
    %11 = tpu.matmul %2, %0, %cst {dimension_numbers = #tpu.dot_dimension_numbers<[1], [0], [0], [1], [0, 0, 1, 1], [], []>} : vector<32x16xf32>, vector<16x8xf32>, vector<32x8xf32> -> vector<32x8xf32>
    %12 = vector.broadcast %3 : vector<32x1xf32> to vector<32x8xf32>
    %13 = arith.addf %11, %12 : vector<32x8xf32>
    %cst_13 = arith.constant 0.000000e+00 : f32
    %14 = vector.broadcast %cst_13 : f32 to vector<32x8xf32>
    %15 = arith.maximumf %13, %14 : vector<32x8xf32>
    %cst_14 = arith.constant dense<0.000000e+00> : vector<32x8xf32>
    %16 = tpu.matmul %4, %15, %cst_14 {dimension_numbers = #tpu.dot_dimension_numbers<[1], [0], [0], [1], [0, 0, 1, 1], [], []>} : vector<32x32xf32>, vector<32x8xf32>, vector<32x8xf32> -> vector<32x8xf32>
    %17 = vector.broadcast %5 : vector<32x1xf32> to vector<32x8xf32>
    %18 = arith.addf %16, %17 : vector<32x8xf32>
    %cst_15 = arith.constant 0.000000e+00 : f32
    %19 = vector.broadcast %cst_15 : f32 to vector<32x8xf32>
    %20 = arith.maximumf %18, %19 : vector<32x8xf32>
    %cst_16 = arith.constant dense<0.000000e+00> : vector<32x8xf32>
    %21 = tpu.matmul %6, %20, %cst_16 {dimension_numbers = #tpu.dot_dimension_numbers<[1], [0], [0], [1], [0, 0, 1, 1], [], []>} : vector<32x32xf32>, vector<32x8xf32>, vector<32x8xf32> -> vector<32x8xf32>
    %cst_17 = arith.constant dense<0.000000e+00> : vector<32x8xf32>
    %22 = tpu.matmul %7, %1, %cst_17 {dimension_numbers = #tpu.dot_dimension_numbers<[1], [0], [0], [1], [0, 0, 1, 1], [], []>} : vector<32x4xf32>, vector<4x8xf32>, vector<32x8xf32> -> vector<32x8xf32>
    %23 = arith.addf %21, %22 : vector<32x8xf32>
    %24 = vector.broadcast %8 : vector<32x1xf32> to vector<32x8xf32>
    %25 = arith.addf %23, %24 : vector<32x8xf32>
    %cst_18 = arith.constant 0.000000e+00 : f32
    %26 = vector.broadcast %cst_18 : f32 to vector<32x8xf32>
    %27 = arith.maximumf %25, %26 : vector<32x8xf32>
    %cst_19 = arith.constant dense<0.000000e+00> : vector<16x8xf32>
    %28 = tpu.matmul %9, %27, %cst_19 {dimension_numbers = #tpu.dot_dimension_numbers<[1], [0], [0], [1], [0, 0, 1, 1], [], []>} : vector<16x32xf32>, vector<32x8xf32>, vector<16x8xf32> -> vector<16x8xf32>
    %29 = vector.broadcast %10 : vector<16x1xf32> to vector<16x8xf32>
    %30 = arith.addf %28, %29 : vector<16x8xf32>
    %c0_20 = arith.constant 0 : index
    %c0_21 = arith.constant 0 : index
    %31 = vector.load %arg3[%c0_20, %c0_21] : memref<16x8xf32, #tpu.memory_space<vmem>>, vector<16x8xf32>
    tpu.vector_store %arg3[%c0_20, %c0_21], %30 {strides = array<i32>} : memref<16x8xf32, #tpu.memory_space<vmem>>, vector<16x8xf32>,
    return
  }
}

</mosaic_0001>

<bundles_post_ra>
// kernel: tpu_custom_call.1
= control target key start
LH: loop header
LB: loop body
LE: loop exit
PB: predicated region body
PF: predicated region fallthrough
CT: control target
= control target key end

     0   :  { %vm69_vm0 = vcmask 130048   ;;  %v762_v3 = vmov 0   ;;  %vm191_vm1 = vcmask 261120   ;;  %vm306_vm2 = vcmask 1043456   ;;  %s908_s0 = inlined_call_operand.vmem [shape: f32[16,8], index: 0, kind: input, shape index: {}]   ;;  %s909_s2 = inlined_call_operand.vmem [shape: f32[256,32], index: 2, kind: input, shape index: {}]   ;;  %s910_s1 = inlined_call_operand.vmem [shape: f32[4,8], index: 1, kind: input, shape index: {}]   ;;  %s911_s3 = inlined_call_operand.vmem [shape: f32[16,8], index: 3, kind: output, shape index: {}]  }
   0x1   :  { %v14_v0 = vld [vmem:[%s908_s0] sm:$0xff]  ;;  %v15_v1 = vld [vmem:[%s908_s0 + $0x8] sm:$0xff]  ;;  %760 = vset.pattern.permute.xlu0 %v762_v3  ;;  %761 = vset.pattern.permute.xlu1 %v762_v3  ;;  %v23_v6 = vld [vmem:[%s909_s2 + $0x30] sm:$0xff]  ;;  %vm293_vm3 = vcmask 31744   ;;  %vm611_vm4 = vcmask 64512  }
   0x2   :  { %v17_v2 = vld [vmem:[%s909_s2] sm:$0xff]  ;;  %v727_v4 = vpack.c.bf16 %v15_v1, %v14_v0  ;;  %v18_v7 = vld [vmem:[%s909_s2 + $0x8] sm:$0xff]  ;;  %61 = vperm.xlu1 %761, %v23_v6   ;;  %v19_v9 = vld [vmem:[%s909_s2 + $0x10] sm:$0xff] }
   0x3   :  { %674 = vmatprep.mubr.msk.f32.mxu1 %vm69_vm0, %v17_v2  ;;  %v21_v5 = vld [vmem:[%s909_s2 + $0x20] sm:$0xff]  ;;  %v22_v8 = vld [vmem:[%s909_s2 + $0x28] sm:$0xff]  ;;  %v24_v10 = vld [vmem:[%s909_s2 + $0x38] sm:$0xff] }
   0x4   :  { %728 = vmatprep.subr.bf16.mxu1 %v727_v4  ;;  %51 = vperm.xlu0 %760, %v21_v5   ;;  %v20_v11 = vld [vmem:[%s909_s2 + $0x18] sm:$0xff]  ;;  %v29_v12 = vld [vmem:[%s909_s2 + $0x60] sm:$0xff]  ;;  %v30_v13 = vld [vmem:[%s909_s2 + $0x68] sm:$0xff] }
   0x5   :  { %730 = vmatpush3.bf16.msra.mxu1 %v727_v4  ;;  %v31_v14 = vld [vmem:[%s909_s2 + $0x70] sm:$0xff]  ;;  %v32_v15 = vld [vmem:[%s909_s2 + $0x78] sm:$0xff]  ;;  %v41_v16 = vld [vmem:[%s909_s2 + $0xc0] sm:$0xff] }
   0x6   :  { %66 = vperm.xlu1 %761, %v24_v10   ;;  %v42_v17 = vld [vmem:[%s909_s2 + $0xc8] sm:$0xff]  ;;  %v43_v18 = vld [vmem:[%s909_s2 + $0xd0] sm:$0xff]  ;;  %v44_v19 = vld [vmem:[%s909_s2 + $0xd8] sm:$0xff] }
   0x7   :  { %v47_v20 = vld [vmem:[%s909_s2 + $0xf0] sm:$0xff]  ;;  %v48_v21 = vld [vmem:[%s909_s2 + $0xf8] sm:$0xff]  ;;  %v25_v22 = vld [vmem:[%s909_s2 + $0x40] sm:$0xff] }
   0x8   :  { %675 = vmatmul.mubr.msk.f32.vlgmr.msra.gmra.mrb[0].mxu1 %vm69_vm0, %v18_v7  ;;  %56 = vperm.xlu0 %760, %v22_v8   ;;  %v26_v41 = vld [vmem:[%s909_s2 + $0x48] sm:$0xff]  ;;  %v27_v42 = vld [vmem:[%s909_s2 + $0x50] sm:$0xff]  ;;  %v28_v43 = vld [vmem:[%s909_s2 + $0x58] sm:$0xff] }
   0x9   :  { %677 = vmatprep.mubr.msk.f32.mxu1 %vm69_vm0, %v19_v9  ;;  %v16_v44 = vld [vmem:[%s910_s1] sm:$0xf]  ;;  %v38_v46 = vld [vmem:[%s909_s2 + $0xa8] sm:$0xff]  ;;  %v39_v47 = vld [vmem:[%s909_s2 + $0xb0] sm:$0xff] }
   0xa   :  { %178 = vperm.xlu1 %761, %v30_v13   ;;  %694 = vmatprep.subr.msk.mxu0 %vm306_vm2, %v16_v44  ;;  %v37_v45 = vld [vmem:[%s909_s2 + $0xa0] sm:$0xff]  ;;  %v40_v48 = vld [vmem:[%s909_s2 + $0xb8] sm:$0xff]  ;;  %v34_v4 = vld [vmem:[%s909_s2 + $0x88] sm:$0xff] }
   0xb   :  { %695 = vmatpush3.msk.msra.mxu0 %vm306_vm2, %v16_v44  ;;  %696 = vmatprep.mubr.msk.f32.mxu0 %vm293_vm3, %v37_v45  ;;  %v33_v49 = vld [vmem:[%s909_s2 + $0x80] sm:$0xff]  ;;  %v35_v5 = vld [vmem:[%s909_s2 + $0x90] sm:$0xff]  ;;  %v36_v6 = vld [vmem:[%s909_s2 + $0x98] sm:$0xff] }
   0xc   :  { %678 = vmatmul.mubr.msk.f32.gmra.mrb[2].mxu1 %vm69_vm0, %v20_v11  ;;  %173 = vperm.xlu0 %760, %v29_v12   ;;  %v45_v7 = vld [vmem:[%s909_s2 + $0xe0] sm:$0xff] }
   0xd   :  { %688 = vmatprep.mubr.msk.f32.mxu1 %vm191_vm1, %v25_v22  ;;  %697 = vmatmul.mubr.msk.f32.vlgmr.msra.gmra.mrb[0].mxu0 %vm293_vm3, %v38_v46 }
   0xe   :  { %188 = vperm.xlu1 %761, %v32_v15   ;;  %699 = vmatprep.mubr.msk.f32.mxu0 %vm293_vm3, %v39_v47 }
  0x10   :  { %183 = vperm.xlu0 %760, %v31_v14  }
  0x11   :  { %700 = vmatmul.mubr.msk.f32.gmra.mrb[2].mxu0 %vm293_vm3, %v40_v48 }
  0x12   :  { %499 = vperm.xlu1 %761, %v42_v17   ;;  %710 = vmatprep.mubr.msk.f32.mxu0 %vm191_vm1, %v33_v49 }
  0x14   :  { %494 = vperm.xlu0 %760, %v41_v16  }
  0x16   :  { %509 = vperm.xlu1 %761, %v44_v19  }
  0x18   :  { %504 = vperm.xlu0 %760, %v43_v18  }
  0x1a   :  { %527 = vperm.xlu1 %761, %v48_v21  }
  0x1c   :  { %522 = vperm.xlu0 %760, %v47_v20  }
  0x81   :  { %v62_v24 = vpop.permute.xlu1 %61 }
  0x83   :  { %v52_v23 = vpop.permute.xlu0 %51 }
  0x85   :  { %v67_v31 = vpop.permute.xlu1 %66 }
  0x87   :  { %v57_v25 = vpop.permute.xlu0 %56 }
  0x89   :  { %v179_v50 = vpop.permute.xlu1 %178 }
  0x8b   :  { %v174_v51 = vpop.permute.xlu0 %173 }
  0x8d   :  { %v189_v57 = vpop.permute.xlu1 %188 }
  0x8f   :  { %v184_v60 = vpop.permute.xlu0 %183 }
  0x91   :  { %v500_v8 = vpop.permute.xlu1 %499 }
  0x93   :  { %v495_v9 = vpop.permute.xlu0 %494 }
  0x95   :  { %v510_v15 = vpop.permute.xlu1 %509 }
  0x97   :  { %v505_v18 = vpop.permute.xlu0 %504 }
  0xdb   :  { %v676_v26 = vpop.f32.mrb[0].mxu1 }
  0xdc   :  { %v154_v27 = vadd.f32 %v676_v26, %v57_v25  ;;  %v148_v28 = vpop.f32.mrb[1].mxu1  ;;  %v46_v26 = vld [vmem:[%s909_s2 + $0xe8] sm:$0xff] }
  0xdd   :  { %v149_v29 = vadd.f32 %v148_v28, %v52_v23 }
  0xde   :  { %v168_v30 = vmax.f32 %v154_v27, 0.0  ;;  %v528_v27 = vpop.permute.xlu1 %527 }
  0xdf   :  { %v167_v32 = vmax.f32 %v149_v29, 0.0  ;;  %v679_v33 = vpop.f32.mrb[2].mxu1  ;;  %v523_v29 = vpop.permute.xlu0 %522 }
  0xe0   :  { %v164_v34 = vadd.f32 %v679_v33, %v67_v31  ;;  %v158_v35 = vpop.f32.mrb[3].mxu1 }
  0xe1   :  { %v731_v36 = vpack.c.bf16 %v168_v30, %v167_v32  ;;  %v159_v37 = vadd.f32 %v158_v35, %v62_v24 }
  0xe2   :  { %v170_v38 = vmax.f32 %v164_v34, 0.0 }
  0xe3   :  { %v169_v39 = vmax.f32 %v159_v37, 0.0  ;;  %732 = vmatprep.subr.bf16.mxu1 %v731_v36 }
  0xe4   :  { %734 = vmatpush3.bf16.msra.mxu1 %v731_v36 }
  0xe5   :  { %v735_v40 = vpack.c.bf16 %v170_v38, %v169_v39 }
  0xe7   :  { %736 = vmatprep.subr.bf16.mxu1 %v735_v40 }
  0xe8   :  { %738 = vmatpush3.bf16.msra.mxu1 %v735_v40 }
  0xeb   :  { %689 = vmatmul.mubr.msk.f32.vlgmr.msra.gmra.mrb[4].mxu1 %vm191_vm1, %v26_v41 }
  0xec   :  { %691 = vmatprep.mubr.msk.f32.mxu1 %vm191_vm1, %v27_v42 }
  0xef   :  { %692 = vmatmul.mubr.msk.f32.gmra.mrb[6].mxu1 %vm191_vm1, %v28_v43 }
 0x1be   :  { %v690_v52 = vpop.f32.mrb[4].mxu1 }
 0x1bf   :  { %v276_v53 = vadd.f32 %v690_v52, %v179_v50  ;;  %v270_v54 = vpop.f32.mrb[5].mxu1 }
 0x1c0   :  { %v271_v55 = vadd.f32 %v270_v54, %v174_v51 }
 0x1c1   :  { %v290_v56 = vmax.f32 %v276_v53, 0.0 }
 0x1c2   :  { %v289_v58 = vmax.f32 %v271_v55, 0.0  ;;  %v693_v59 = vpop.f32.mrb[6].mxu1 }
 0x1c3   :  { %v286_v61 = vadd.f32 %v693_v59, %v189_v57  ;;  %v280_v62 = vpop.f32.mrb[7].mxu1 }
 0x1c4   :  { %v739_v63 = vpack.c.bf16 %v290_v56, %v289_v58  ;;  %v281_v0 = vadd.f32 %v280_v62, %v184_v60 }
 0x1c5   :  { %v292_v1 = vmax.f32 %v286_v61, 0.0 }
 0x1c6   :  { %v291_v2 = vmax.f32 %v281_v0, 0.0  ;;  %740 = vmatprep.subr.bf16.mxu0 %v739_v63 }
 0x1c7   :  { %742 = vmatpush3.bf16.msra.mxu0 %v739_v63 }
 0x1c8   :  { %v743_v3 = vpack.c.bf16 %v292_v1, %v291_v2 }
 0x1ca   :  { %744 = vmatprep.subr.bf16.mxu0 %v743_v3 }
 0x1cb   :  { %746 = vmatpush3.bf16.msra.mxu0 %v743_v3 }
 0x1ce   :  { %711 = vmatmul.mubr.msk.f32.vlgmr.msra.gmra.mrb[0].mxu0 %vm191_vm1, %v34_v4 }
 0x1cf   :  { %713 = vmatprep.mubr.msk.f32.mxu0 %vm191_vm1, %v35_v5 }
 0x1d2   :  { %714 = vmatmul.mubr.msk.f32.gmra.mrb[2].mxu0 %vm191_vm1, %v36_v6 }
 0x1d3   :  { %724 = vmatprep.mubr.msk.f32.mxu0 %vm191_vm1, %v45_v7 }
 0x2a1   :  { %v712_v10 = vpop.f32.mrb[0].mxu0 }
 0x2a2   :  { %v513_v11 = vadd.f32 %v712_v10, %v500_v8  ;;  %v473_v12 = vpop.f32.mrb[1].mxu0 }
 0x2a3   :  { %v512_v13 = vadd.f32 %v495_v9, %v473_v12 }
 0x2a4   :  { %v517_v14 = vmax.f32 %v513_v11, 0.0 }
 0x2a5   :  { %v516_v16 = vmax.f32 %v512_v13, 0.0  ;;  %v715_v17 = vpop.f32.mrb[2].mxu0 }
 0x2a6   :  { %v515_v19 = vadd.f32 %v715_v17, %v510_v15  ;;  %v483_v20 = vpop.f32.mrb[3].mxu0 }
 0x2a7   :  { %v747_v21 = vpack.c.bf16 %v517_v14, %v516_v16  ;;  %v514_v22 = vadd.f32 %v505_v18, %v483_v20 }
 0x2a8   :  { %v519_v23 = vmax.f32 %v515_v19, 0.0 }
 0x2a9   :  { %v518_v24 = vmax.f32 %v514_v22, 0.0  ;;  %748 = vmatprep.subr.bf16.mxu0 %v747_v21 }
 0x2aa   :  { %750 = vmatpush3.bf16.msra.mxu0 %v747_v21 }
 0x2ab   :  { %v751_v25 = vpack.c.bf16 %v519_v23, %v518_v24 }
 0x2ad   :  { %752 = vmatprep.subr.bf16.mxu0 %v751_v25 }
 0x2ae   :  { %754 = vmatpush3.bf16.msra.mxu0 %v751_v25 }
 0x2b1   :  { %725 = vmatmul.mubr.msk.f32.vlgmr.msra.gmra.mrb[4].mxu0 %vm191_vm1, %v46_v26 }
 0x384   :  { %v726_v28 = vpop.f32.mrb[4].mxu0 }
 0x385   :  { %v608_v30 = vadd.f32 %v726_v28, %v528_v27  ;;  %v602_v31 = vpop.f32.mrb[5].mxu0 }
 0x386   :  { %v603_v32 = vadd.f32 %v602_v31, %v523_v29 }
 0x387   :  { %613 = vst.msk [vmem:[%s911_s3 + $0x8] sm:$0xff] %vm611_vm4, %v608_v30 }
 0x388   :  { %612 = vst.msk [vmem:[%s911_s3] sm:$0xff] %vm611_vm4, %v603_v32 }

</bundles_post_ra>
